<compile_context>
chip_gen: v6e
topology: v6e:2x2x1
jax: 0.10.0
libtpu: 0.0.40
codegen_flags: <defaults>
</compile_context>

<pallas_src>
import jax
import jax.numpy as jnp
from jax import lax
from jax.experimental import pallas as pl
from jax.experimental.pallas import tpu as pltpu

LANE = 128              # vreg lane width
ROW_CAP = 1024          # max sublane rows per block (row tiling above this)
MAX_TILE = 512 * LANE   # cap on the lane tile (bounds the unrolled slice-add loop)


def _device_kind():
    try:
        return jax.devices()[0].device_kind.lower()
    except Exception:
        return ""


def _num_tensorcores():
    """Best-effort TensorCore count per device (megacore v4/v5p, v7x -> 2)."""
    n = 1
    try:
        info = pltpu.get_tpu_info()
        for attr in ("num_cores", "core_count", "num_tensorcores", "tensorcore_count"):
            try:
                v = int(getattr(info, attr))
                if v > 0:
                    n = max(n, v)
            except (AttributeError, TypeError, ValueError):
                pass
    except Exception:
        pass
    kind = _device_kind()
    if ("v4" in kind) or ("v5p" in kind) or ("v7" in kind):
        n = max(n, 2)
    return min(n, 2)


def _default_step_budget_bytes():
    # v7x streams ~2-4x faster per TC, so use bigger per-step tiles to keep the
    # ~0.35us fixed per-step overhead <5% of step time.  v5e/v6e keep 4 MiB
    # steps (already 6-10us of HBM traffic) and stay well under scoped VMEM.
    if "v7" in _device_kind():
        return 10 * 1024 * 1024
    return 4 * 1024 * 1024


def _make_partial_sums_kernel(Rb, tile, accw, cols, T, J, needs_mask):
    """Kernel accumulating lane-dense per-row [sum(p*t), sum(p+t)] partials."""
    k = tile // accw  # number of accw-wide lane slices per tile (tile % accw == 0)

    def kernel(p_ref, t_ref, o_ref):
        c = pl.program_id(0)   # core split of the column-tile axis
        j = pl.program_id(2)   # reduction axis (innermost)

        @pl.when(j == 0)
        def _():
            o_ref[...] = jnp.zeros_like(o_ref)

        def accumulate(masked, col0=None):
            # Lane-aligned 128-wide slice adds (pure VALU); cross-lane reduce
            # is deferred to the JAX finalize.  Stores are full-width vst at
            # lane offsets 0 and accw.
            pt_acc = jnp.zeros((Rb, accw), jnp.float32)
            s_acc = jnp.zeros((Rb, accw), jnp.float32)
            for s in range(k):
                off = s * accw
                ps = p_ref[:, off:off + accw].astype(jnp.float32)
                ts = t_ref[:, off:off + accw].astype(jnp.float32)
                if masked:
                    gidx = lax.broadcasted_iota(jnp.int32, (Rb, accw), 1) + (col0 + off)
                    valid = gidx < cols
                    ps = jnp.where(valid, ps, 0.0)
                    ts = jnp.where(valid, ts, 0.0)
                pt_acc = pt_acc + ps * ts
                s_acc = s_acc + (ps + ts)
            o_ref[0, :, 0:accw] += pt_acc
            o_ref[0, :, accw:2 * accw] += s_acc

        if needs_mask:
            g = c * J + j              # global (unclamped) column-tile index
            col0 = g * tile
            is_edge = g >= (T - 1)     # ragged last tile or clamped duplicate tile

            @pl.when(jnp.logical_not(is_edge))
            def _():
                accumulate(False)

            @pl.when(is_edge)
            def _():
                accumulate(True, col0)
        else:
            accumulate(False)

    return kernel


def binary_dice_loss_pallas(predict, target, *, smooth=1e-5, reduction="sum",
                            vmem_budget_bytes=None):
    """BinaryDiceLoss forward. predict/target: (N, *) with identical shapes.

    Narrow input dtypes (bf16 predict, int8/bool target) are supported directly
    and cut HBM traffic; accumulation is always f32 in-kernel.
    """
    assert predict.shape[0] == target.shape[0], "predict & target batch size don't match"
    N = predict.shape[0]
    p = predict.reshape(N, -1)
    t = target.reshape(N, -1)
    assert p.shape == t.shape, "predict & target shape don't match"
    M = p.shape[1]

    pb = jnp.dtype(p.dtype).itemsize
    tb = jnp.dtype(t.dtype).itemsize
    if vmem_budget_bytes is None:
        vmem_budget_bytes = _default_step_budget_bytes()

    # --- dtype-aware sublane packing (free reshape; NEVER pads HBM) ----------
    preferred = max(8 * max(1, 4 // pb), 8 * max(1, 4 // tb))
    while preferred > 8 and (M // preferred) < LANE:   # keep lane axis >= 1 vreg wide
        preferred //= 2
    sub = preferred
    while sub > 1 and (M % sub) != 0:                  # must divide M exactly
        sub //= 2
    R = N * sub
    cols = M // sub                                    # exact; no padding anywhere

    # --- row tiling -----------------------------------------------------------
    if R <= ROW_CAP:
        Rb, nR = R, 1            # block row dim == full array dim (always legal)
    else:
        Rb = ROW_CAP             # multiple of 32 -> dense sublanes for any dtype
        nR = -(-R // Rb)         # ragged last row block reads garbage rows that only
                                 # land in output rows >= R, which the finalize drops

    # --- lane (column) tiling -------------------------------------------------
    if cols < LANE:
        tile = accw = cols       # block last dim == full array dim (legal escape)
    else:
        accw = LANE
        bytes_per_col = Rb * (pb + tb)
        budget_tile = max(LANE, (vmem_budget_bytes // bytes_per_col) // LANE * LANE)
        tile = int(min(budget_tile, (cols // LANE) * LANE, MAX_TILE))
    T = -(-cols // tile)         # number of column tiles

    # --- dual-TensorCore split of the column-tile axis (gated on core count) --
    P = max(1, min(_num_tensorcores(), T))
    J = -(-T // P)
    needs_mask = (cols % tile != 0) or (P * J != T)

    out_rows = nR * Rb

    # --- VMEM sizing: double-buffered in/out blocks + headroom; never capped
    #     below the computed need ---------------------------------------------
    in_block = Rb * tile * (pb + tb)
    out_block = Rb * 2 * accw * 4
    vmem_limit = int(2 * in_block + 2 * out_block + (4 << 20))

    kernel = _make_partial_sums_kernel(Rb, tile, accw, cols, T, J, needs_mask)

    # Clamp the block index so no block starts past the array end; duplicate
    # (clamped) tiles contribute zero via the in-kernel mask.
    in_index_map = lambda c, r, j: (r, jnp.minimum(c * J + j, T - 1))
    out_index_map = lambda c, r, j: (c, r, 0)

    p2 = p.reshape(R, cols)      # free, layout-preserving reshapes
    t2 = t.reshape(R, cols)

    partials = pl.pallas_call(
        kernel,
        out_shape=jax.ShapeDtypeStruct((P, out_rows, 2 * accw), jnp.float32),
        grid_spec=pltpu.PrefetchScalarGridSpec(
            num_scalar_prefetch=0,
            grid=(P, nR, J),
            in_specs=[
                pl.BlockSpec((Rb, tile), in_index_map),
                pl.BlockSpec((Rb, tile), in_index_map),
            ],
            out_specs=pl.BlockSpec((1, Rb, 2 * accw), out_index_map),
        ),
        compiler_params=pltpu.CompilerParams(
            dimension_semantics=("parallel", "parallel", "arbitrary"),
            vmem_limit_bytes=vmem_limit,
        ),
        cost_estimate=pl.CostEstimate(
            flops=4 * N * M,
            transcendentals=0,
            bytes_accessed=N * M * (pb + tb) + P * out_rows * 2 * accw * 4,
        ),
    )(p2, t2)

    # --- finalize (tiny, done in JAX) -----------------------------------------
    acc = partials.sum(axis=0)[:R]                 # (R, 2*accw); drop padded rows
    acc = acc.reshape(N, sub, 2, accw)
    pt_sum = acc[:, :, 0, :].sum(axis=(1, 2))      # sum(p*t) per sample
    s_sum = acc[:, :, 1, :].sum(axis=(1, 2))       # sum(p) + sum(t) per sample
    num = 2.0 * pt_sum + smooth
    den = s_sum + smooth
    loss = 1.0 - num / den                         # (N,)

    if reduction == "mean":
        return loss.mean()
    elif reduction == "sum":
        return loss.sum()
    elif reduction == "none":
        return loss
    else:
        raise Exception("Unexpected reduction {}".format(reduction))


def binary_dice_loss_ref(predict, target, smooth=1e-5, reduction="sum"):
    """Pure-JAX reference mirroring the PyTorch BinaryDiceLoss forward."""
    N = predict.shape[0]
    p = predict.reshape(N, -1).astype(jnp.float32)
    t = target.reshape(N, -1).astype(jnp.float32)
    num = 2.0 * jnp.sum(p * t, axis=1) + smooth
    den = jnp.sum(p, axis=1) + jnp.sum(t, axis=1) + smooth
    loss = 1.0 - num / den
    if reduction == "mean":
        return loss.mean()
    elif reduction == "sum":
        return loss.sum()
    elif reduction == "none":
        return loss
    else:
        raise Exception("Unexpected reduction {}".format(reduction))


if __name__ == "__main__":
    key = jax.random.PRNGKey(0)
    k1, k2, k3 = jax.random.split(key, 3)

    # Case 1: lane-aligned feature size (N=2, C=4, H=W=16 -> M=1024).
    N, C, H, W = 2, 4, 16, 16
    logits = jax.random.normal(k1, (N, C, H, W), dtype=jnp.float32)
    predict = jax.nn.sigmoid(logits)                               # probabilities
    labels = jax.random.randint(k2, (N, H, W), 0, C)
    target = jax.nn.one_hot(labels, C, axis=1, dtype=jnp.float32)  # (N, C, H, W)

    loss = jax.block_until_ready(binary_dice_loss_pallas(predict, target))
    ref = jax.block_until_ready(binary_dice_loss_ref(predict, target))
    assert jnp.allclose(loss, ref, rtol=1e-5, atol=1e-5), (loss, ref)

    # Case 2: ragged feature size (M=1600 -> packed cols=200, exercises the
    # in-kernel edge-tile masking path instead of any HBM padding).
    predict2 = jax.nn.sigmoid(jax.random.normal(k3, (2, 1, 40, 40), dtype=jnp.float32))
    target2 = (predict2 > 0.5).astype(jnp.float32)
    loss2 = jax.block_until_ready(binary_dice_loss_pallas(predict2, target2))
    ref2 = jax.block_until_ready(binary_dice_loss_ref(predict2, target2))
    assert jnp.allclose(loss2, ref2, rtol=1e-5, atol=1e-5), (loss2, ref2)

    print("KERNEL_OK")
</pallas_src>

<mosaic_0001>
module attributes {stable_mosaic.version = 11 : i64} {
  func.func @kernel(%arg0: i32, %arg1: i32, %arg2: i32, %arg3: memref<16x128xf32, #tpu.memory_space<vmem>>, %arg4: memref<16x128xf32, #tpu.memory_space<vmem>>, %arg5: memref<1x16x256xf32, #tpu.memory_space<vmem>>) attributes {dimension_semantics = [#tpu.dimension_semantics<parallel>, #tpu.dimension_semantics<parallel>, #tpu.dimension_semantics<arbitrary>], iteration_bounds = array<i64: 1, 1, 1>, scalar_prefetch = 0 : i64, scratch_operands = 0 : i64, tpu.core_type = #tpu.core_type<tc>, window_params = [{transform_indices = @transform_0, window_bounds = array<i64: 16, 128>}, {transform_indices = @transform_1, window_bounds = array<i64: 16, 128>}, {transform_indices = @transform_2, window_bounds = array<i64: 1, 16, 256>}]} {
    %c0_i32 = arith.constant 0 : i32
    %0 = arith.cmpi eq, %arg2, %c0_i32 : i32
    %1 = arith.extui %0 : i1 to i32
    %c0_i32_0 = arith.constant 0 : i32
    %2 = arith.cmpi ne, %1, %c0_i32_0 : i32
    scf.if %2 {
      %cst_16 = arith.constant 0.000000e+00 : f32
      %23 = vector.broadcast %cst_16 : f32 to vector<1x16x256xf32>
      %c0_17 = arith.constant 0 : index
      %c0_18 = arith.constant 0 : index
      %c0_19 = arith.constant 0 : index
      %24 = vector.load %arg5[%c0_17, %c0_18, %c0_19] : memref<1x16x256xf32, #tpu.memory_space<vmem>>, vector<1x16x256xf32>
      tpu.vector_store %arg5[%c0_17, %c0_18, %c0_19], %23 {strides = array<i32>} : memref<1x16x256xf32, #tpu.memory_space<vmem>>, vector<1x16x256xf32>,
    } else {
    }
    %cst = arith.constant 0.000000e+00 : f32
    %3 = vector.broadcast %cst : f32 to vector<16x128xf32>
    %cst_1 = arith.constant 0.000000e+00 : f32
    %4 = vector.broadcast %cst_1 : f32 to vector<16x128xf32>
    %c0 = arith.constant 0 : index
    %c0_2 = arith.constant 0 : index
    %5 = vector.load %arg3[%c0, %c0_2] : memref<16x128xf32, #tpu.memory_space<vmem>>, vector<16x128xf32>
    %c0_3 = arith.constant 0 : index
    %c0_4 = arith.constant 0 : index
    %6 = vector.load %arg4[%c0_3, %c0_4] : memref<16x128xf32, #tpu.memory_space<vmem>>, vector<16x128xf32>
    %7 = arith.mulf %5, %6 : vector<16x128xf32>
    %8 = arith.addf %3, %7 : vector<16x128xf32>
    %9 = arith.addf %5, %6 : vector<16x128xf32>
    %10 = arith.addf %4, %9 : vector<16x128xf32>
    %c0_5 = arith.constant 0 : index
    %c0_6 = arith.constant 0 : index
    %c0_7 = arith.constant 0 : index
    %11 = vector.load %arg5[%c0_5, %c0_6, %c0_7] : memref<1x16x256xf32, #tpu.memory_space<vmem>>, vector<1x16x128xf32>
    %12 = vector.shape_cast %11 : vector<1x16x128xf32> to vector<16x128xf32>
    %13 = arith.addf %12, %8 : vector<16x128xf32>
    %c0_8 = arith.constant 0 : index
    %c0_9 = arith.constant 0 : index
    %c0_10 = arith.constant 0 : index
    %14 = vector.load %arg5[%c0_8, %c0_9, %c0_10] : memref<1x16x256xf32, #tpu.memory_space<vmem>>, vector<1x16x128xf32>
    %15 = vector.shape_cast %14 : vector<1x16x128xf32> to vector<16x128xf32>
    %16 = vector.shape_cast %13 : vector<16x128xf32> to vector<1x16x128xf32>
    tpu.vector_store %arg5[%c0_8, %c0_9, %c0_10], %16 {strides = array<i32>} : memref<1x16x256xf32, #tpu.memory_space<vmem>>, vector<1x16x128xf32>,
    %c0_11 = arith.constant 0 : index
    %c0_12 = arith.constant 0 : index
    %c128 = arith.constant 128 : index
    %17 = vector.load %arg5[%c0_11, %c0_12, %c128] : memref<1x16x256xf32, #tpu.memory_space<vmem>>, vector<1x16x128xf32>
    %18 = vector.shape_cast %17 : vector<1x16x128xf32> to vector<16x128xf32>
    %19 = arith.addf %18, %10 : vector<16x128xf32>
    %c0_13 = arith.constant 0 : index
    %c0_14 = arith.constant 0 : index
    %c128_15 = arith.constant 128 : index
    %20 = vector.load %arg5[%c0_13, %c0_14, %c128_15] : memref<1x16x256xf32, #tpu.memory_space<vmem>>, vector<1x16x128xf32>
    %21 = vector.shape_cast %20 : vector<1x16x128xf32> to vector<16x128xf32>
    %22 = vector.shape_cast %19 : vector<16x128xf32> to vector<1x16x128xf32>
    tpu.vector_store %arg5[%c0_13, %c0_14, %c128_15], %22 {strides = array<i32>} : memref<1x16x256xf32, #tpu.memory_space<vmem>>, vector<1x16x128xf32>,
    return
  }
  func.func @transform_0(%arg0: i32, %arg1: i32, %arg2: i32) -> (i32, i32) {
    %c1_i32 = arith.constant 1 : i32
    %0 = arith.muli %arg0, %c1_i32 : i32
    %1 = arith.addi %0, %arg2 : i32
    %c0_i32 = arith.constant 0 : i32
    %2 = arith.minsi %1, %c0_i32 : i32
    %c0_i32_0 = arith.constant 0 : i32
    return %arg1, %2 : i32, i32
  }
  func.func @transform_1(%arg0: i32, %arg1: i32, %arg2: i32) -> (i32, i32) {
    %c1_i32 = arith.constant 1 : i32
    %0 = arith.muli %arg0, %c1_i32 : i32
    %1 = arith.addi %0, %arg2 : i32
    %c0_i32 = arith.constant 0 : i32
    %2 = arith.minsi %1, %c0_i32 : i32
    %c0_i32_0 = arith.constant 0 : i32
    return %arg1, %2 : i32, i32
  }
  func.func @transform_2(%arg0: i32, %arg1: i32, %arg2: i32) -> (i32, i32, i32) {
    %c0_i32 = arith.constant 0 : i32
    %c0_i32_0 = arith.constant 0 : i32
    return %arg0, %arg1, %c0_i32 : i32, i32, i32
  }
}

</mosaic_0001>

<bundles_post_ra>
// kernel: tpu_custom_call.1
= control target key start
LH: loop header
LB: loop body
LE: loop exit
PB: predicated region body
PF: predicated region fallthrough
CT: control target
= control target key end

     0   :  { %7 = vsyncpa [#allocation3], 0  ;;  %s215_s0 = inlined_call_operand.hbm [shape: f32[16,128], index: 0, kind: input, shape index: {}]   ;;  %s216_s1 = inlined_call_operand.hbm [shape: f32[16,128], index: 1, kind: input, shape index: {}]   ;;  %s217_s2 = inlined_call_operand.hbm [shape: f32[1,16,256], index: 2, kind: output, shape index: {}]  }
   0x1   :  { %8 = vsyncpa [#allocation6], 0 }
   0x2   :  { %9 = vsyncpa [#allocation4], 0  ;;  %s184_s9 = smov [#allocation2]  }
   0x3   :  { %s20_s10 = sshll.u32 %s184_s9, 4  ;;  %s21_s10 = int_to_ptr.vmem [resolvable:$true] %s20_s10 }
   0x4   :  { %s126_s11 = scalar_lea.vmem %s21_s10, 256  ;;  %p131_p1 = scmp.lt.s32.totalorder %s21_s10, %s21_s10 }
   0x5   :  { %p127_p0 = scmp.ne.s32.totalorder %s21_s10, %s126_s11  ;;  %p132_p2 = scmp.lt.s32.totalorder %s126_s11, %s126_s11 }
   0x7   :  { %p133_p3 = por %p132_p2, %p131_p1 }
   0x9   :  { %p134_p4 = pnand %p133_p3, %p127_p0 }
   0xb   :  { %137 = shalt.err (!%p134_p4)
}
   0xc   :  { %s185_s12 = smov 128   ;;  %s186_s13 = smov 8  }
   0xd   :  { %26 = dma.hbm_to_vmem [thread:$0]  %s215_s0, 256, %s21_s10, [#allocation3], %s185_s12, %s185_s12, %s186_s13  }
   0xe   :  { %s187_s16 = smov [#allocation5]  }
   0xf   :  { %s37_s17 = sshll.u32 %s187_s16, 4  ;;  %s38_s17 = int_to_ptr.vmem [resolvable:$true] %s37_s17 }
  0x10   :  { %s146_s18 = scalar_lea.vmem %s38_s17, 256  ;;  %p151_p6 = scmp.lt.s32.totalorder %s38_s17, %s38_s17 }
  0x11   :  { %p147_p5 = scmp.ne.s32.totalorder %s38_s17, %s146_s18  ;;  %p152_p7 = scmp.lt.s32.totalorder %s146_s18, %s146_s18 }
  0x13   :  { %p153_p8 = por %p152_p7, %p151_p6 }
  0x15   :  { %p154_p9 = pnand %p153_p8, %p147_p5 }
  0x17   :  { %157 = shalt.err (!%p154_p9)
}
  0x18   :  { %43 = dma.hbm_to_vmem [thread:$0]  %s216_s1, 256, %s38_s17, [#allocation6], %s185_s12, %s185_s12, %s186_s13  }
  0x19   :  { %178 = dma.done.wait [#allocation3], 256  }
  0x1a   :  { %179 = vsyncadd [#allocation3], 4294967040 }
  0x1b   :  { %180 = dma.done.wait [#allocation6], 256  }
  0x1c   :  { %181 = vsyncadd [#allocation6], 4294967040  ;;  %v64_v0 = vld [vmem:[#allocation2] sm:$0xff]  ;;  %v66_v1 = vld [vmem:[#allocation5] sm:$0xff]  ;;  %s188_s0 = smov [#allocation7]  }
  0x1d   :  { %v65_v2 = vld [vmem:[#allocation2 + $0x8] sm:$0xff]  ;;  %v68_v3 = vmul.f32 %v66_v1, %v64_v0  ;;  %v67_v4 = vld [vmem:[#allocation5 + $0x8] sm:$0xff]  ;;  %v72_v5 = vadd.f32 %v66_v1, %v64_v0  ;;  %s93_s21 = sshll.u32 %s188_s0, 4  ;;  %s94_s21 = int_to_ptr.vmem [resolvable:$true] %s93_s21 }
  0x1e   :  { %v69_v6 = vmul.f32 %v67_v4, %v65_v2  ;;  %v73_v7 = vadd.f32 %v67_v4, %v65_v2  ;;  %s158_s1 = scalar_lea.vmem %s94_s21, 512  ;;  %p163_p11 = scmp.lt.s32.totalorder %s94_s21, %s94_s21 }
  0x1f   :  { %80 = vst [vmem:[#allocation7] sm:$0xff] %v68_v3  ;;  %86 = vst [vmem:[#allocation7 + $0x8] sm:$0xff] %v72_v5  ;;  %p159_p10 = scmp.ne.s32.totalorder %s94_s21, %s158_s1  ;;  %p164_p12 = scmp.lt.s32.totalorder %s158_s1, %s158_s1 }
  0x20   :  { %81 = vst [vmem:[#allocation7 + $0x10] sm:$0xff] %v69_v6  ;;  %87 = vst [vmem:[#allocation7 + $0x18] sm:$0xff] %v73_v7 }
  0x21   :  { %p165_p13 = por %p164_p12, %p163_p11 }
  0x23   :  { %p166_p0 = pnand %p165_p13, %p159_p10 }
  0x25   :  { %169 = shalt.err (!%p166_p0)
}
  0x26   :  { %s189_s22 = smov 256   ;;  %s190_s23 = smov 16  }
  0x27   :  { %99 = dma.vmem_to_hbm [thread:$0]  %s94_s21, 512, %s217_s2, [#allocation4], %s189_s22, %s189_s22, %s190_s23  }
  0x28   :  { %182 = dma.done.wait [#allocation4], 512  }
  0x29   :  { %183 = vsyncadd [#allocation4], 4294966784 }
  0x2a   :  { %103 = vsyncpa [#allocation3], 1 }
  0x2b   :  { %104 = vsyncpa [#allocation6], 1 }
  0x2c   :  { %105 = vsyncpa [#allocation4], 1 }

</bundles_post_ra>
